<compile_context>
chip_gen: v7x
topology: tpu7x:2x2x1
jax: 0.10.0
libtpu: 0.0.40
codegen_flags: <defaults>
</compile_context>

<pallas_src>
import functools
import math

import jax
import jax.numpy as jnp
from jax import lax
from jax.experimental import pallas as pl
from jax.experimental.pallas import tpu as pltpu


def _biaffine_kernel(from_ref, to_ref, u_ref, fb_ref, out_ref, wt_ref,
                     *, n_out, bias0, bias1):
    """One grid step of grid = (B, n_y, n_x), X-tiles innermost.

    from_ref: (Xt, F)      input tile (any float dtype; cast to bf16 in VMEM)
    to_ref:   (Yt, T)      input tile
    u_ref:    (O, T1, F)   bf16 packed weight, u_ref[o, t, f] == U[f, o, t]
    fb_ref:   (1, Yt*O)    f32 from-bias row (precomputed; unused if not bias0)
    out_ref:  (Xt, Yt*O)   output tile, columns (y, o) y-major
    wt_ref:   (Yt*O, F)    bf16 scratch, built once per (b, y-tile), reused
                           across all X-tiles.
    """
    xi = pl.program_id(2)

    @pl.when(xi == 0)
    def _build_wt():
        t = to_ref[...].astype(jnp.bfloat16)                  # (Yt, T)
        if bias1:
            ones = jnp.ones((t.shape[0], 1), dtype=t.dtype)
            t = jnp.concatenate([t, ones], axis=-1)           # (Yt, T1) once/yi
        parts = []
        for o in range(n_out):
            u_o = u_ref[o]                                    # (T1, F) bf16
            # wt_o[y, f] = sum_t to_aug[y, t] * U[f, o, t]   (NN matmul on MXU)
            wt_o = lax.dot_general(
                t, u_o,
                dimension_numbers=(((1,), (0,)), ((), ())),
                preferred_element_type=jnp.float32)           # (Yt, F) f32
            parts.append(wt_o[:, None, :])                    # (Yt, 1, F)
        wt3 = jnp.concatenate(parts, axis=1)                  # (Yt, O, F)
        # Merge the two leading dims (minor dim untouched): rows become (y, o)
        # y-major == the flattened output column order.  Cast to bf16 at the
        # store so the hot matmul below is MXU-native.
        wt_ref[...] = wt3.reshape(wt_ref.shape).astype(wt_ref.dtype)

    f = from_ref[...].astype(jnp.bfloat16)                    # (Xt, F) bf16
    # out[x, y*O+o] = sum_f from[x, f] * WT[y*O+o, f]   (bf16 MXU, f32 acc).
    # NT form (contract last dims of both), same as flash-attention's q @ k^T,
    # lowers to the MXU without an explicit transpose pass.
    s = lax.dot_general(
        f, wt_ref[...],
        dimension_numbers=(((1,), (1,)), ((), ())),
        preferred_element_type=jnp.float32)                   # (Xt, Yt*O)
    if bias0:
        s = s + fb_ref[...]                                   # broadcast row add
    out_ref[...] = s.astype(out_ref.dtype)


def pack_biaffine_u(U, bias=(True, True), dtype=jnp.bfloat16):
    """Torch-layout weight (F1, O, T1) -> kernel layout.  Do this ONCE at init.

    Returns (u_main, u_fbias):
      u_main:  (O, T1, F) with u_main[o, t, f] == U[f, o, t]   (NN build dots)
      u_fbias: (O, T1)    with u_fbias[o, t]  == U[F, o, t]    (None if no from-bias)
    """
    F1, O, T1 = U.shape
    Fm = F1 - int(bias[0])
    u_main = jnp.transpose(U[:Fm], (1, 2, 0)).astype(dtype)
    u_fbias = U[Fm].astype(dtype) if bias[0] else None
    return u_main, u_fbias


def _divisors_desc(n):
    return [d for d in range(n, 0, -1) if n % d == 0]


def _pick_x_tile(X, target):
    """Largest divisor of X <= target that is a multiple of 16 (else 8, else X)."""
    for align in (16, 8):
        for d in _divisors_desc(X):
            if d <= target and d % align == 0:
                return d
    return X


def _pick_y_tile(Y, O, target, yo_cap):
    """Largest divisor Yt of Y with Yt*O a multiple of 128 (lane-dense output),
    preferring Yt <= target and Yt*O <= yo_cap.  Only falls back to Yt = Y
    (full minor dim, always legal) when no aligned divisor exists."""
    need = 128 // math.gcd(O, 128)
    divs = _divisors_desc(Y)
    for cap_rows, cap_cols in ((target, yo_cap), (Y, yo_cap), (Y, Y * O)):
        for d in divs:
            if (d % need == 0 and (d % 8 == 0 or d == Y)
                    and d <= cap_rows and d * O <= cap_cols):
                return d
    return Y


def biaffine_einsum(from_tensor, to_tensor, u_main, u_fbias=None,
                    bias=(True, True), *, x_tile=256, y_tile=256,
                    yo_cap=2048, out_dtype=jnp.float32):
    """Pallas BiaffineEinsum forward.

    from_tensor: (B, X, F), to_tensor: (B, Y, T)  (f32 or bf16; cast in-kernel).
    u_main / u_fbias: packed weights from pack_biaffine_u.
    Returns (B, X, Y, O) out_dtype == torch.einsum('bxf,fot,byt->bxyo') on
    bias-augmented inputs.
    """
    bias = (bool(bias[0]), bool(bias[1]))
    B, X, F = from_tensor.shape
    B2, Y, T = to_tensor.shape
    assert B2 == B
    O, T1, F2 = u_main.shape
    assert F2 == F and T1 == T + int(bias[1])
    if bias[0]:
        assert u_fbias is not None and u_fbias.shape == (O, T1)

    # From-bias contribution (independent of x): tiny (B, Y, O) einsum in f32,
    # passed in as a lane-dense (B, 1, Y*O) row and added in-kernel with one
    # broadcast VPU add.  This removes the per-X-step ones-concat and keeps the
    # hot contraction length exactly F.
    if bias[0]:
        ufb = u_fbias.astype(jnp.float32)
        fb = jnp.einsum('byt,ot->byo', to_tensor.astype(jnp.float32), ufb[:, :T],
                        precision=lax.Precision.HIGHEST)
        if bias[1]:
            fb = fb + ufb[:, T][None, None, :]
        fb = fb.reshape(B, 1, Y * O).astype(jnp.float32)
    else:
        fb = jnp.zeros((B, 1, Y * O), jnp.float32)

    Xt = _pick_x_tile(X, x_tile)
    Yt = _pick_y_tile(Y, O, y_tile, yo_cap)
    n_x = X // Xt
    n_y = Y // Yt
    grid = (B, n_y, n_x)  # X-tiles innermost: the WT scratch is reused across them.

    out_itemsize = jnp.dtype(out_dtype).itemsize
    f_itemsize = jnp.dtype(from_tensor.dtype).itemsize
    t_itemsize = jnp.dtype(to_tensor.dtype).itemsize
    u_itemsize = jnp.dtype(u_main.dtype).itemsize

    # Footprint-derived VMEM budget (double-buffered pipeline blocks + scratch),
    # clamped so the same config is safe on v7x (64 MiB/TC) and v5e/v6e.
    footprint = (2 * Xt * F * f_itemsize            # from tile
                 + 2 * Yt * T * t_itemsize          # to tile
                 + 2 * u_main.size * u_itemsize     # constant U (pipeline = 2 bufs)
                 + 2 * Yt * O * 4                   # from-bias row
                 + 2 * Xt * Yt * O * out_itemsize   # out tile
                 + Yt * O * F * 2)                  # bf16 WT scratch
    vmem_limit = int(min(max(2 * footprint, 16 * 1024 * 1024), 64 * 1024 * 1024))

    # WT build runs once per (b, y-tile); hot matmul once per grid step.
    flops = 2 * B * (Y * T1 * O * F + X * F * Y * O)
    bytes_accessed = (from_tensor.size * f_itemsize
                      + to_tensor.size * t_itemsize
                      + u_main.size * u_itemsize
                      + fb.size * 4
                      + B * X * Y * O * out_itemsize)

    kernel = functools.partial(_biaffine_kernel, n_out=O,
                               bias0=bias[0], bias1=bias[1])

    out = pl.pallas_call(
        kernel,
        out_shape=jax.ShapeDtypeStruct((B, X, Y * O), out_dtype),
        grid=grid,
        in_specs=[
            pl.BlockSpec((None, Xt, F), lambda b, yi, xi: (b, xi, 0)),
            pl.BlockSpec((None, Yt, T), lambda b, yi, xi: (b, yi, 0)),
            pl.BlockSpec((O, T1, F), lambda b, yi, xi: (0, 0, 0)),
            pl.BlockSpec((None, 1, Yt * O), lambda b, yi, xi: (b, 0, yi)),
        ],
        out_specs=pl.BlockSpec((None, Xt, Yt * O), lambda b, yi, xi: (b, xi, yi)),
        scratch_shapes=[pltpu.VMEM((Yt * O, F), jnp.bfloat16)],
        compiler_params=pltpu.CompilerParams(
            dimension_semantics=("parallel", "parallel", "arbitrary"),
            vmem_limit_bytes=vmem_limit),
        cost_estimate=pl.CostEstimate(
            flops=flops, transcendentals=0, bytes_accessed=bytes_accessed),
    )(from_tensor, to_tensor, u_main, fb)

    # (B, X, Y*O) -> (B, X, Y, O): free metadata reshape, no HBM transpose pass.
    return out.reshape(B, X, Y, O)


def init_biaffine_params(key, from_size, to_size, out_size, bias=(True, True)):
    """Deterministic kaiming_uniform_(a=sqrt(5)) equivalent for U (torch layout)."""
    f1 = from_size + int(bias[0])
    t1 = to_size + int(bias[1])
    shape = (f1, out_size, t1)
    fan_in = out_size * t1  # PyTorch fan_in for a 3-D tensor (d0, d1, d2): d1*d2
    gain = math.sqrt(2.0 / (1.0 + 5.0))  # a = sqrt(5)
    bound = gain * math.sqrt(3.0 / fan_in)
    return jax.random.uniform(key, shape, jnp.float32, -bound, bound)


if __name__ == "__main__":
    key = jax.random.PRNGKey(0)
    k1, k2, k3 = jax.random.split(key, 3)

    B, X, Y = 2, 16, 16
    from_size, to_size, out_size = 32, 32, 8
    bias = (True, True)

    from_tensor = jax.random.normal(
        k1, (B, X, from_size), jnp.float32).astype(jnp.bfloat16)
    to_tensor = jax.random.normal(
        k2, (B, Y, to_size), jnp.float32).astype(jnp.bfloat16)
    U = init_biaffine_params(k3, from_size, to_size, out_size, bias)  # torch layout

    u_main, u_fbias = pack_biaffine_u(U, bias)  # once, at "parameter init" time

    out = biaffine_einsum(from_tensor, to_tensor, u_main, u_fbias, bias)
    out = jax.block_until_ready(out)

    # Reference: plain-JAX einsum in f32 on the same bf16-rounded operands.
    f32 = jnp.float32
    f_aug = jnp.concatenate(
        [from_tensor.astype(f32), jnp.ones((B, X, 1), f32)], axis=-1)
    t_aug = jnp.concatenate(
        [to_tensor.astype(f32), jnp.ones((B, Y, 1), f32)], axis=-1)
    ref = jnp.einsum('bxf,fot,byt->bxyo',
                     f_aug, U.astype(jnp.bfloat16).astype(f32), t_aug,
                     precision=lax.Precision.HIGHEST)

    assert out.shape == (B, X, Y, out_size)
    max_err = float(jnp.max(jnp.abs(out - ref)))
    assert jnp.allclose(out, ref, atol=5e-2, rtol=5e-2), max_err

    print("KERNEL_OK")
</pallas_src>

<mosaic_0001>
module attributes {stable_mosaic.version = 11 : i64} {
  func.func @_biaffine_kernel(%arg0: i32, %arg1: i32, %arg2: i32, %arg3: memref<1x16x32xbf16, #tpu.memory_space<vmem>>, %arg4: memref<1x16x32xbf16, #tpu.memory_space<vmem>>, %arg5: memref<8x33x32xbf16, #tpu.memory_space<vmem>>, %arg6: memref<1x1x128xf32, #tpu.memory_space<vmem>>, %arg7: memref<1x16x128xf32, #tpu.memory_space<vmem>>, %arg8: memref<128x32xbf16, #tpu.memory_space<vmem>>) attributes {dimension_semantics = [#tpu.dimension_semantics<parallel>, #tpu.dimension_semantics<parallel>, #tpu.dimension_semantics<arbitrary>], iteration_bounds = array<i64: 2, 1, 1>, scalar_prefetch = 0 : i64, scratch_operands = 1 : i64, tpu.core_type = #tpu.core_type<tc>, window_params = [{transform_indices = @transform_0, window_bounds = array<i64: 1, 16, 32>}, {transform_indices = @transform_1, window_bounds = array<i64: 1, 16, 32>}, {pipeline_mode = #tpu.pipeline_mode<synchronous>, transform_indices = @transform_2, window_bounds = array<i64: 8, 33, 32>}, {transform_indices = @transform_3, window_bounds = array<i64: 1, 1, 128>}, {transform_indices = @transform_4, window_bounds = array<i64: 1, 16, 128>}]} {
    %c0_i32 = arith.constant 0 : i32
    %0 = arith.cmpi eq, %arg2, %c0_i32 : i32
    %1 = arith.extui %0 : i1 to i32
    %c0_i32_0 = arith.constant 0 : i32
    %2 = arith.cmpi ne, %1, %c0_i32_0 : i32
    scf.if %2 {
      %c0_11 = arith.constant 0 : index
      %c0_12 = arith.constant 0 : index
      %c0_13 = arith.constant 0 : index
      %14 = vector.load %arg4[%c0_11, %c0_12, %c0_13] : memref<1x16x32xbf16, #tpu.memory_space<vmem>>, vector<1x16x32xbf16>
      %15 = vector.shape_cast %14 : vector<1x16x32xbf16> to vector<16x32xbf16>
      %cst_14 = arith.constant 1.000000e+00 : bf16
      %16 = vector.broadcast %cst_14 : bf16 to vector<16x1xbf16>
      %17 = tpu.concatenate %15, %16 in 1 : vector<16x32xbf16>, vector<16x1xbf16> -> vector<16x33xbf16>
      %c0_15 = arith.constant 0 : index
      %c0_16 = arith.constant 0 : index
      %c0_17 = arith.constant 0 : index
      %18 = vector.load %arg5[%c0_15, %c0_16, %c0_17] : memref<8x33x32xbf16, #tpu.memory_space<vmem>>, vector<1x33x32xbf16>
      %19 = vector.shape_cast %18 : vector<1x33x32xbf16> to vector<33x32xbf16>
      %cst_18 = arith.constant dense<0.000000e+00> : vector<16x32xf32>
      %20 = tpu.matmul %17, %19, %cst_18 {dimension_numbers = #tpu.dot_dimension_numbers<[1], [0], [0], [1], [0, 0, 1, 1], [], []>} : vector<16x33xbf16>, vector<33x32xbf16>, vector<16x32xf32> -> vector<16x32xf32>
      %21 = vector.shape_cast %20 : vector<16x32xf32> to vector<16x1x32xf32>
      %c1 = arith.constant 1 : index
      %c0_19 = arith.constant 0 : index
      %c0_20 = arith.constant 0 : index
      %22 = vector.load %arg5[%c1, %c0_19, %c0_20] : memref<8x33x32xbf16, #tpu.memory_space<vmem>>, vector<1x33x32xbf16>
      %23 = vector.shape_cast %22 : vector<1x33x32xbf16> to vector<33x32xbf16>
      %cst_21 = arith.constant dense<0.000000e+00> : vector<16x32xf32>
      %24 = tpu.matmul %17, %23, %cst_21 {dimension_numbers = #tpu.dot_dimension_numbers<[1], [0], [0], [1], [0, 0, 1, 1], [], []>} : vector<16x33xbf16>, vector<33x32xbf16>, vector<16x32xf32> -> vector<16x32xf32>
      %25 = vector.shape_cast %24 : vector<16x32xf32> to vector<16x1x32xf32>
      %c2 = arith.constant 2 : index
      %c0_22 = arith.constant 0 : index
      %c0_23 = arith.constant 0 : index
      %26 = vector.load %arg5[%c2, %c0_22, %c0_23] : memref<8x33x32xbf16, #tpu.memory_space<vmem>>, vector<1x33x32xbf16>
      %27 = vector.shape_cast %26 : vector<1x33x32xbf16> to vector<33x32xbf16>
      %cst_24 = arith.constant dense<0.000000e+00> : vector<16x32xf32>
      %28 = tpu.matmul %17, %27, %cst_24 {dimension_numbers = #tpu.dot_dimension_numbers<[1], [0], [0], [1], [0, 0, 1, 1], [], []>} : vector<16x33xbf16>, vector<33x32xbf16>, vector<16x32xf32> -> vector<16x32xf32>
      %29 = vector.shape_cast %28 : vector<16x32xf32> to vector<16x1x32xf32>
      %c3 = arith.constant 3 : index
      %c0_25 = arith.constant 0 : index
      %c0_26 = arith.constant 0 : index
      %30 = vector.load %arg5[%c3, %c0_25, %c0_26] : memref<8x33x32xbf16, #tpu.memory_space<vmem>>, vector<1x33x32xbf16>
      %31 = vector.shape_cast %30 : vector<1x33x32xbf16> to vector<33x32xbf16>
      %cst_27 = arith.constant dense<0.000000e+00> : vector<16x32xf32>
      %32 = tpu.matmul %17, %31, %cst_27 {dimension_numbers = #tpu.dot_dimension_numbers<[1], [0], [0], [1], [0, 0, 1, 1], [], []>} : vector<16x33xbf16>, vector<33x32xbf16>, vector<16x32xf32> -> vector<16x32xf32>
      %33 = vector.shape_cast %32 : vector<16x32xf32> to vector<16x1x32xf32>
      %c4 = arith.constant 4 : index
      %c0_28 = arith.constant 0 : index
      %c0_29 = arith.constant 0 : index
      %34 = vector.load %arg5[%c4, %c0_28, %c0_29] : memref<8x33x32xbf16, #tpu.memory_space<vmem>>, vector<1x33x32xbf16>
      %35 = vector.shape_cast %34 : vector<1x33x32xbf16> to vector<33x32xbf16>
      %cst_30 = arith.constant dense<0.000000e+00> : vector<16x32xf32>
      %36 = tpu.matmul %17, %35, %cst_30 {dimension_numbers = #tpu.dot_dimension_numbers<[1], [0], [0], [1], [0, 0, 1, 1], [], []>} : vector<16x33xbf16>, vector<33x32xbf16>, vector<16x32xf32> -> vector<16x32xf32>
      %37 = vector.shape_cast %36 : vector<16x32xf32> to vector<16x1x32xf32>
      %c5 = arith.constant 5 : index
      %c0_31 = arith.constant 0 : index
      %c0_32 = arith.constant 0 : index
      %38 = vector.load %arg5[%c5, %c0_31, %c0_32] : memref<8x33x32xbf16, #tpu.memory_space<vmem>>, vector<1x33x32xbf16>
      %39 = vector.shape_cast %38 : vector<1x33x32xbf16> to vector<33x32xbf16>
      %cst_33 = arith.constant dense<0.000000e+00> : vector<16x32xf32>
      %40 = tpu.matmul %17, %39, %cst_33 {dimension_numbers = #tpu.dot_dimension_numbers<[1], [0], [0], [1], [0, 0, 1, 1], [], []>} : vector<16x33xbf16>, vector<33x32xbf16>, vector<16x32xf32> -> vector<16x32xf32>
      %41 = vector.shape_cast %40 : vector<16x32xf32> to vector<16x1x32xf32>
      %c6 = arith.constant 6 : index
      %c0_34 = arith.constant 0 : index
      %c0_35 = arith.constant 0 : index
      %42 = vector.load %arg5[%c6, %c0_34, %c0_35] : memref<8x33x32xbf16, #tpu.memory_space<vmem>>, vector<1x33x32xbf16>
      %43 = vector.shape_cast %42 : vector<1x33x32xbf16> to vector<33x32xbf16>
      %cst_36 = arith.constant dense<0.000000e+00> : vector<16x32xf32>
      %44 = tpu.matmul %17, %43, %cst_36 {dimension_numbers = #tpu.dot_dimension_numbers<[1], [0], [0], [1], [0, 0, 1, 1], [], []>} : vector<16x33xbf16>, vector<33x32xbf16>, vector<16x32xf32> -> vector<16x32xf32>
      %45 = vector.shape_cast %44 : vector<16x32xf32> to vector<16x1x32xf32>
      %c7 = arith.constant 7 : index
      %c0_37 = arith.constant 0 : index
      %c0_38 = arith.constant 0 : index
      %46 = vector.load %arg5[%c7, %c0_37, %c0_38] : memref<8x33x32xbf16, #tpu.memory_space<vmem>>, vector<1x33x32xbf16>
      %47 = vector.shape_cast %46 : vector<1x33x32xbf16> to vector<33x32xbf16>
      %cst_39 = arith.constant dense<0.000000e+00> : vector<16x32xf32>
      %48 = tpu.matmul %17, %47, %cst_39 {dimension_numbers = #tpu.dot_dimension_numbers<[1], [0], [0], [1], [0, 0, 1, 1], [], []>} : vector<16x33xbf16>, vector<33x32xbf16>, vector<16x32xf32> -> vector<16x32xf32>
      %49 = vector.shape_cast %48 : vector<16x32xf32> to vector<16x1x32xf32>
      %50 = tpu.concatenate %21, %25, %29, %33, %37, %41, %45, %49 in 1 : vector<16x1x32xf32>, vector<16x1x32xf32>, vector<16x1x32xf32>, vector<16x1x32xf32>, vector<16x1x32xf32>, vector<16x1x32xf32>, vector<16x1x32xf32>, vector<16x1x32xf32> -> vector<16x8x32xf32>
      %51 = vector.shape_cast %50 : vector<16x8x32xf32> to vector<128x32xf32>
      %52 = arith.truncf %51 : vector<128x32xf32> to vector<128x32xbf16>
      %c0_40 = arith.constant 0 : index
      %c0_41 = arith.constant 0 : index
      %53 = vector.load %arg8[%c0_40, %c0_41] : memref<128x32xbf16, #tpu.memory_space<vmem>>, vector<128x32xbf16>
      tpu.vector_store %arg8[%c0_40, %c0_41], %52 {strides = array<i32>} : memref<128x32xbf16, #tpu.memory_space<vmem>>, vector<128x32xbf16>,
    } else {
    }
    %c0 = arith.constant 0 : index
    %c0_1 = arith.constant 0 : index
    %c0_2 = arith.constant 0 : index
    %3 = vector.load %arg3[%c0, %c0_1, %c0_2] : memref<1x16x32xbf16, #tpu.memory_space<vmem>>, vector<1x16x32xbf16>
    %4 = vector.shape_cast %3 : vector<1x16x32xbf16> to vector<16x32xbf16>
    %c0_3 = arith.constant 0 : index
    %c0_4 = arith.constant 0 : index
    %5 = vector.load %arg8[%c0_3, %c0_4] : memref<128x32xbf16, #tpu.memory_space<vmem>>, vector<128x32xbf16>
    %cst = arith.constant dense<0.000000e+00> : vector<16x128xf32>
    %6 = tpu.matmul %4, %5, %cst {dimension_numbers = #tpu.dot_dimension_numbers<[1], [1], [0], [0], [0, 0, 1, 0], [], []>} : vector<16x32xbf16>, vector<128x32xbf16>, vector<16x128xf32> -> vector<16x128xf32>
    %c0_5 = arith.constant 0 : index
    %c0_6 = arith.constant 0 : index
    %c0_7 = arith.constant 0 : index
    %7 = vector.load %arg6[%c0_5, %c0_6, %c0_7] : memref<1x1x128xf32, #tpu.memory_space<vmem>>, vector<1x1x128xf32>
    %8 = vector.shape_cast %7 : vector<1x1x128xf32> to vector<1x128xf32>
    %9 = vector.broadcast %8 : vector<1x128xf32> to vector<16x128xf32>
    %10 = arith.addf %6, %9 : vector<16x128xf32>
    %c0_8 = arith.constant 0 : index
    %c0_9 = arith.constant 0 : index
    %c0_10 = arith.constant 0 : index
    %11 = vector.load %arg7[%c0_8, %c0_9, %c0_10] : memref<1x16x128xf32, #tpu.memory_space<vmem>>, vector<1x16x128xf32>
    %12 = vector.shape_cast %11 : vector<1x16x128xf32> to vector<16x128xf32>
    %13 = vector.shape_cast %10 : vector<16x128xf32> to vector<1x16x128xf32>
    tpu.vector_store %arg7[%c0_8, %c0_9, %c0_10], %13 {strides = array<i32>} : memref<1x16x128xf32, #tpu.memory_space<vmem>>, vector<1x16x128xf32>,
    return
  }
  func.func @transform_0(%arg0: i32, %arg1: i32, %arg2: i32) -> (i32, i32, i32) {
    %c0_i32 = arith.constant 0 : i32
    %c0_i32_0 = arith.constant 0 : i32
    return %arg0, %arg2, %c0_i32 : i32, i32, i32
  }
  func.func @transform_1(%arg0: i32, %arg1: i32, %arg2: i32) -> (i32, i32, i32) {
    %c0_i32 = arith.constant 0 : i32
    %c0_i32_0 = arith.constant 0 : i32
    return %arg0, %arg1, %c0_i32 : i32, i32, i32
  }
  func.func @transform_2(%arg0: i32, %arg1: i32, %arg2: i32) -> (i32, i32, i32) {
    %c0_i32 = arith.constant 0 : i32
    %c0_i32_0 = arith.constant 0 : i32
    %c0_i32_1 = arith.constant 0 : i32
    %c0_i32_2 = arith.constant 0 : i32
    return %c0_i32, %c0_i32_0, %c0_i32_1 : i32, i32, i32
  }
  func.func @transform_3(%arg0: i32, %arg1: i32, %arg2: i32) -> (i32, i32, i32) {
    %c0_i32 = arith.constant 0 : i32
    %c0_i32_0 = arith.constant 0 : i32
    return %arg0, %c0_i32, %arg1 : i32, i32, i32
  }
  func.func @transform_4(%arg0: i32, %arg1: i32, %arg2: i32) -> (i32, i32, i32) {
    %c0_i32 = arith.constant 0 : i32
    return %arg0, %arg2, %arg1 : i32, i32, i32
  }
}

</mosaic_0001>

<bundles_post_ra>
// kernel: tpu_custom_call.1
= control target key start
LH: loop header
LB: loop body
LE: loop exit
PB: predicated region body
PF: predicated region fallthrough
CT: control target
= control target key end

     0   :  { %9 = vsyncpa [#allocation4], 0  ;;  %s3924_s0 = inlined_call_operand.vmem [shape: bf16[2,16,32], index: 0, kind: input, shape index: {}]   ;;  %s3925_s1 = inlined_call_operand.vmem [shape: bf16[2,16,32], index: 1, kind: input, shape index: {}]   ;;  %s3926_s2 = inlined_call_operand.vmem [shape: bf16[8,33,32], index: 2, kind: input, shape index: {}]   ;;  %s3927_s3 = inlined_call_operand.vmem [shape: f32[2,1,128], index: 3, kind: input, shape index: {}]   ;;  %s3928_s4 = inlined_call_operand.hbm [shape: f32[2,16,128], index: 4, kind: output, shape index: {}]  }
   0x1   :  { %11 = vsyncpa [#allocation4 + $0x1], 0  ;;  %s3001_s15 = smov 0   ;;  %s3003_s16 = smov 0  }
   0x2   :  { %s3005_s17 = smov 0   ;;  %s3007_s18 = smov 0  }
   0x3   :  { %s3009_s19 = smov 0   ;;  %s3011_s20 = smov 0  }
   0x4 LB: > { %s2572_s21 = sadd.s32 4294967295, %s2967_s20   ;;  %s2573_s22 = sadd.s32 4294967294, %s2967_s20   ;;  %s2967_s20 = sphi %s3011_s20, %s17_s20   ;;  %s2963_s19 = sphi %s3009_s19, %s3935_s19   ;;  %s2959_s18 = sphi %s3007_s18, %s3934_s18   ;;  %s2955_s17 = sphi %s3005_s17, %s3933_s17   ;;  %s2951_s16 = sphi %s3003_s16, %s3932_s16   ;;  %s2947_s15 = sphi %s3001_s15, %s3931_s15  }
   0x5   : > { %s36_s23 = sadd.s32 1, %s2963_s19  ;;  %s152_s24 = sadd.s32 1, %s2955_s17 }
   0x6   : > { %p38_p0 = scmp.ge.s32.totalorder %s36_s23, 2  ;;  %p162_p1 = scmp.ne.s32.totalorder %s2955_s17, %s2951_s16 }
   0x7   : > { %p163_p2 = scmp.eq.s32.totalorder %s2572_s21, 1  ;;  %p168_p3 = scmp.ne.s32.totalorder %s2951_s16, %s2947_s15 }
   0x8   : > { %s3937_s23 = smov (%p38_p0, %s36_s23), 0  ;;  %p169_p5 = scmp.eq.s32.totalorder %s2573_s22, 1 }
   0x9   : > { %p3041_p4 = por %p163_p2, %p162_p1  ;;  %s145_s26 = ssub.s32 %s2963_s19, %s3937_s23 }
   0xa   : > { %p2576_p6 = scmp.ge.s32.totalorder %s2967_s20, 1  ;;  %p150_p7 = scmp.eq.s32.totalorder %s145_s26, 0 }
   0xb   : > { %p3048_p8 = por %p169_p5, %p168_p3  ;;  %p225_p9 = scmp.lt.s32.totalorder %s2967_s20, 3 }
   0xc   : > { %s3054_s28 = scalar_select %p150_p7, %s2955_s17, %s152_s24  }
   0xd   : > { %p226_p10 = pnand %p2576_p6, %p225_p9 }
   0xe   : > { %v2863_v0 = vld [vmem:[%s3926_s2] sm:$0xff] (!%p226_p10)   ;;  %v2969_v1 = vmov (!%p226_p10), 0.0   ;;  %v2864_v2 = vld [vmem:[%s3926_s2 + $0x8] sm:$0xff] (!%p226_p10)   ;;  %vm337_vm0 = vcmask (!%p226_p10), 1040384   ;;  %v2970_v4 = vmov (!%p226_p10), 0   ;;  %p271_p11 = scmp.lt.s32.totalorder (!%p226_p10), %s2959_s18, 1  ;;  %v390_v39 = vlaneseq (!%p226_p10) }
   0xf   : > { %229 = sbr.rel (%p226_p10) target bundleno = 654 (0x28e), region = 36  ;;  %2702 = vmatprep.subr.bf16.mxu1 (!%p226_p10), %v2969_v1  ;;  %2762 = vmatprep.subr.bf16.mxu0 (!%p226_p10), %v2969_v1  ;;  %v2865_v3 = vld [vmem:[%s3926_s2 + $0x10] ss:$0 sps:$4 sm:$0x11] (!%p226_p10)   ;;  %v3069_v5 = vsel (!%p226_p10), %vm337_vm0, 65535, %v2970_v4  ;;  %vm2971_vm1 = vmmov (!%p226_p10), 0  }
  0x10   : > { %2703 = vmatpush3.bf16.msra.mxu1 (!%p226_p10), %v2863_v0  ;;  %2708 = vmatprep.mubr.msk.bf16.mxu1 (!%p226_p10), %vm2971_vm1, %v2969_v1  ;;  %v341_v6 = vand.u32 (!%p226_p10), %v2865_v3, %v3069_v5  ;;  %vm310_vm2 = vcmask (!%p226_p10), 261120   ;;  %vm334_vm3 = vcmask (!%p226_p10), 269312   ;;  %v2867_v8 = vld [vmem:[%s3926_s2 + $0x14] sm:$0xff] (!%p226_p10)   ;;  %v2869_v10 = vld [vmem:[%s3926_s2 + $0x24] ss:$0 sps:$4 sm:$0x11] (!%p226_p10)  }
  0x11   : > { %2704 = vmatprep.subr.bf16.mxu1 (!%p226_p10), %v2969_v1  ;;  %2768 = vmatprep.mubr.msk.bf16.mxu0 (!%p226_p10), %vm2971_vm1, %v2969_v1  ;;  %v2868_v11 = vld [vmem:[%s3926_s2 + $0x1c] sm:$0xff] (!%p226_p10)   ;;  %v522_v13 = vand.u32 (!%p226_p10), %v2869_v10, %v3069_v5  ;;  %v2870_v15 = vld [vmem:[%s3926_s2 + $0x28] sm:$0xff] (!%p226_p10)   ;;  %v2871_v18 = vld [vmem:[%s3926_s2 + $0x30] sm:$0xff] (!%p226_p10)   ;;  %v2972_v37 = vmov (!%p226_p10), 1966171168   ;;  %v391_v41 = vshrl.u32 (!%p226_p10), %v390_v39, 7 }
  0x12   : > { %v2880_v12 = vld [vmem:[%s3926_s2 + $0x78] sm:$0xff] (!%p226_p10)   ;;  %v2882_v14 = vld [vmem:[%s3926_s2 + $0x80] sm:$0xff] (!%p226_p10)   ;;  %v2884_v16 = vld [vmem:[%s3926_s2 + $0x88] ss:$0 sps:$4 sm:$0x11] (!%p226_p10)   ;;  %v388_v38 = vunpack.c.l.s4 (!%p226_p10), %v2972_v37  ;;  %vm2231_vm4 = vcmask (!%p226_p10), 1041408  }
  0x13   : > { %2763 = vmatpush3.bf16.msra.mxu0 (!%p226_p10), %v2880_v12  ;;  %v1347_v17 = vand.u32 (!%p226_p10), %v2884_v16, %v3069_v5  ;;  %v2872_v19 = vld [vmem:[%s3926_s2 + $0x38] ss:$0 sps:$4 sm:$0x11] (!%p226_p10)   ;;  %v2873_v21 = vld [vmem:[%s3926_s2 + $0x3c] sm:$0xff] (!%p226_p10)   ;;  %v2874_v22 = vld [vmem:[%s3926_s2 + $0x44] sm:$0xff] (!%p226_p10)   ;;  %vm2248_vm5 = vcmask (!%p226_p10), 1042432  }
  0x14   : > { %2705 = vmatpush3.bf16.msra.mxu1 (!%p226_p10), %v2864_v2  ;;  %2764 = vmatprep.subr.bf16.mxu0 (!%p226_p10), %v2969_v1  ;;  %v687_v20 = vand.u32 (!%p226_p10), %v2872_v19, %v3069_v5  ;;  %v2875_v23 = vld [vmem:[%s3926_s2 + $0x4c] ss:$0 sps:$4 sm:$0x11] (!%p226_p10)   ;;  %v2876_v25 = vld [vmem:[%s3926_s2 + $0x50] sm:$0xff] (!%p226_p10)   ;;  %v2877_v26 = vld [vmem:[%s3926_s2 + $0x58] sm:$0xff] (!%p226_p10)   ;;  %v389_v40 = vunpack.c.0.s8 (!%p226_p10), %v388_v38  ;;  %vm2265_vm6 = vcmask (!%p226_p10), 1043456  }
  0x15   : > { %2706 = vmatprep.subr.bf16.mxu1 (!%p226_p10), %v2969_v1  ;;  %v852_v24 = vand.u32 (!%p226_p10), %v2875_v23, %v3069_v5  ;;  %v2878_v27 = vld [vmem:[%s3926_s2 + $0x60] ss:$0 sps:$4 sm:$0x11] (!%p226_p10)   ;;  %v2879_v29 = vld [vmem:[%s3926_s2 + $0x64] sm:$0xff] (!%p226_p10)   ;;  %v2881_v30 = vld [vmem:[%s3926_s2 + $0x6c] sm:$0xff] (!%p226_p10)   ;;  %vm2282_vm7 = vcmask (!%p226_p10), 1044480  }
  0x16   : > { %s3077_s9 = scalar_select %p271_p11, %s2959_s18, 1  ;;  %v1017_v28 = vand.u32 %v2878_v27, %v3069_v5  ;;  %v2883_v31 = vld [vmem:[%s3926_s2 + $0x74] ss:$0 sps:$4 sm:$0x11]   ;;  %v2885_v33 = vld [vmem:[%s3926_s2 + $0x8c] sm:$0xff]   ;;  %v3211_v42 = vsub.s32 %v389_v40, %v391_v41  ;;  %vm2299_vm8 = vcmask 1045504  }
  0x17   : > { %2765 = vmatpush3.bf16.msra.mxu0 %v2882_v14  ;;  %v1182_v32 = vand.u32 %v2883_v31, %v3069_v5  ;;  %v2886_v34 = vld [vmem:[%s3926_s2 + $0x94] sm:$0xff]   ;;  %v2887_v35 = vld [vmem:[%s3926_s2 + $0x9c] ss:$0 sps:$4 sm:$0x11]   ;;  %vm2316_vm9 = vcmask 1046528   ;;  %s2660_s7 = sshll.u32 %s2959_s18, 8 }
  0x18   : > { %s2658_s10 = sshll.u32 %s3077_s9, 3  ;;  %2707 = vmatpush3.bf16.msra.mxu1 %v341_v6  ;;  %2766 = vmatprep.subr.bf16.mxu0 %v2969_v1  ;;  %v1512_v36 = vand.u32 %v2887_v35, %v3069_v5  ;;  %v3236_v6 = vsub.s32 0, %v391_v41  ;;  %s295_s30 = scalar_lea.vmem %s3927_s3, %s3077_s9 }
  0x19   : > { %s288_s13 = scalar_lea.vmem %s3925_s1, %s2658_s10  ;;  %2712 = vmatprep.subr.bf16.mxu1 %v2969_v1  ;;  %s3459_s22 = scalar_lea.vmem %s3924_s0, %s2658_s10 }
  0x1a   : > { %v2866_v7 = vld [vmem:[%s288_s13] sm:$0xff]   ;;  %s267_s10 = sand.u32 1, %s2951_s16   ;;  %s3876_s9 = scalar_lea.hbm %s3928_s4, %s2660_s7 }
  0x1b   : > { %v3091_v9 = vsel %vm310_vm2, %v2866_v7, 1065369472  ;;  %2767 = vmatpush3.bf16.msra.mxu0 %v1347_v17  ;;  %s2577_s24 = sshll.u32 %s267_s10, 4  ;;  %s3878_s12 = scalar_lea.sflag [#allocation4], %s267_s10 }
  0x1c   : > { %2709 = vmatmul.mubr.msk.bf16.vlgmr.msra.gmra.mrb[0].mxu1 %vm334_vm3, %v3091_v9  ;;  %2782 = vmatprep.subr.bf16.mxu0 %v2969_v1  ;;  %s269_s5 = scalar_lea.vmem [#allocation3], %s2577_s24  ;;  %s2973_s13 = smov [#allocation3]  }
  0x1d   : > { %2713 = vmatpush3.bf16.msra.mxu1 %v2867_v8  ;;  %2718 = vmatprep.mubr.msk.bf16.mxu1 %vm2971_vm1, %v2969_v1  ;;  %s2459_s6 = sshll.u32 %s269_s5, 4  ;;  %s2893_s14 = sshll.u32 %s2973_s13, 4  ;;  %s3871_s6 = int_to_ptr.vmem [resolvable:$true] %s2459_s6  ;;  %s2894_s14 = int_to_ptr.vmem [resolvable:$false] %s2893_s14 }
  0x1e   : > { %2714 = vmatprep.subr.bf16.mxu1 %v2969_v1  ;;  %2769 = vmatmul.mubr.msk.bf16.vlgmr.msra.gmra.mrb[0].mxu0 %vm334_vm3, %v3091_v9  ;;  %s2889_s18 = scalar_lea.vmem %s3871_s6, 256  ;;  %s2895_s21 = scalar_lea.vmem %s2894_s14, 512 }
  0x1f   : > { %2798 = vmatprep.mubr.msk.bf16.mxu0 %vm2971_vm1, %v2969_v1  ;;  %p2890_p12 = scmp.ne.s32.totalorder %s3871_s6, %s2889_s18  ;;  %p2896_p1 = scmp.lt.s32.totalorder %s3871_s6, %s2894_s14 }
  0x20   : > { %p2897_p2 = scmp.lt.s32.totalorder %s2895_s21, %s2889_s18 }
  0x21   : > { %2715 = vmatpush3.bf16.msra.mxu1 %v2868_v11  ;;  %p2891_p13 = pnand %p2890_p12, %p3041_p4 }
  0x22   : > { %2716 = vmatprep.subr.bf16.mxu1 %v2969_v1  ;;  %p2898_p3 = por %p2897_p2, %p2896_p1 }
  0x23   : > { %p2892_p0 = pneg %p2891_p13 }
  0x25   : > { %2717 = vmatpush3.bf16.msra.mxu1 %v522_v13  ;;  %p2899_p5 = pnand %p2898_p3, %p2892_p0 }
  0x26   : > { %2722 = vmatprep.subr.bf16.mxu1 %v2969_v1 }
  0x28   : > { %2719 = vmatmul.mubr.msk.bf16.vlgmr.msra.gmra.mrb[4].mxu1 %vm334_vm3, %v3091_v9 }
  0x29   : > { %2723 = vmatpush3.bf16.msra.mxu1 %v2870_v15  ;;  %2728 = vmatprep.mubr.msk.bf16.mxu1 %vm2971_vm1, %v2969_v1 }
  0x2a   : > { %2724 = vmatprep.subr.bf16.mxu1 %v2969_v1 }
  0x2d   : > { %2725 = vmatpush3.bf16.msra.mxu1 %v2871_v18 }
  0x2e   : > { %2726 = vmatprep.subr.bf16.mxu1 %v2969_v1 }
  0x31   : > { %2727 = vmatpush3.bf16.msra.mxu1 %v687_v20 }
  0x32   : > { %2732 = vmatprep.subr.bf16.mxu1 %v2969_v1 }
  0x34   : > { %2729 = vmatmul.mubr.msk.bf16.vlgmr.msra.gmra.mrb[8].mxu1 %vm334_vm3, %v3091_v9 }
  0x35   : > { %2733 = vmatpush3.bf16.msra.mxu1 %v2873_v21  ;;  %2738 = vmatprep.mubr.msk.bf16.mxu1 %vm2971_vm1, %v2969_v1 }
  0x36   : > { %2734 = vmatprep.subr.bf16.mxu1 %v2969_v1 }
  0x39   : > { %2735 = vmatpush3.bf16.msra.mxu1 %v2874_v22 }
  0x3a   : > { %2736 = vmatprep.subr.bf16.mxu1 %v2969_v1 }
  0x3d   : > { %2737 = vmatpush3.bf16.msra.mxu1 %v852_v24 }
  0x3e   : > { %2742 = vmatprep.subr.bf16.mxu1 %v2969_v1 }
  0x40   : > { %2739 = vmatmul.mubr.msk.bf16.vlgmr.msra.gmra.mrb[12].mxu1 %vm334_vm3, %v3091_v9 }
  0x41   : > { %2743 = vmatpush3.bf16.msra.mxu1 %v2876_v25  ;;  %2748 = vmatprep.mubr.msk.bf16.mxu1 %vm2971_vm1, %v2969_v1 }
  0x42   : > { %2744 = vmatprep.subr.bf16.mxu1 %v2969_v1 }
  0x45   : > { %2745 = vmatpush3.bf16.msra.mxu1 %v2877_v26 }
  0x46   : > { %2746 = vmatprep.subr.bf16.mxu1 %v2969_v1 }
  0x49   : > { %2747 = vmatpush3.bf16.msra.mxu1 %v1017_v28 }
  0x4a   : > { %2752 = vmatprep.subr.bf16.mxu1 %v2969_v1 }
  0x4c   : > { %2749 = vmatmul.mubr.msk.bf16.vlgmr.msra.gmra.mrb[16].mxu1 %vm334_vm3, %v3091_v9 }
  0x4d   : > { %2753 = vmatpush3.bf16.msra.mxu1 %v2879_v29  ;;  %2758 = vmatprep.mubr.msk.bf16.mxu1 %vm2971_vm1, %v2969_v1 }
  0x4e   : > { %2754 = vmatprep.subr.bf16.mxu1 %v2969_v1 }
  0x51   : > { %2755 = vmatpush3.bf16.msra.mxu1 %v2881_v30 }
  0x52   : > { %2756 = vmatprep.subr.bf16.mxu1 %v2969_v1 }
  0x55   : > { %2757 = vmatpush3.bf16.msra.mxu1 %v1182_v32 }
  0x56   : > { %2772 = vmatprep.subr.bf16.mxu1 %v2969_v1 }
  0x58   : > { %2759 = vmatmul.mubr.msk.bf16.vlgmr.msra.gmra.mrb[20].mxu1 %vm334_vm3, %v3091_v9 }
  0x59   : > { %2773 = vmatpush3.bf16.msra.mxu1 %v2885_v33  ;;  %2778 = vmatprep.mubr.msk.bf16.mxu1 %vm2971_vm1, %v2969_v1 }
  0x5a   : > { %2774 = vmatprep.subr.bf16.mxu1 %v2969_v1 }
  0x5d   : > { %2775 = vmatpush3.bf16.msra.mxu1 %v2886_v34 }
  0x5e   : > { %2776 = vmatprep.subr.bf16.mxu1 %v2969_v1 }
  0x61   : > { %2777 = vmatpush3.bf16.msra.mxu1 %v1512_v36 }
  0x64   : > { %2779 = vmatmul.mubr.msk.bf16.vlgmr.msra.gmra.mrb[24].mxu1 %vm334_vm3, %v3091_v9 }
  0xef   : > { %v377_v43 = vpop.f32.mrb[0].mxu1 }
  0xf0   : > { %v386_v44 = vcombine.high %v377_v43, %v377_v43  ;;  %v2710_v45 = vpop.f32.mrb[1].mxu1  ;;  %v393_v46 = vrot.slane %v377_v43, %v3211_v42 }
  0xf1   : > { %v380_v47 = vpop.f32.mrb[2].mxu1  ;;  %v3253_v26 = vpop.f32.mrb[0].mxu0 }
  0xf2   : > { %v400_v48 = vrot.slane %v386_v44, %v3211_v42  ;;  %v435_v49 = vcombine.high %v380_v47, %v380_v47  ;;  %v2711_v50 = vpop.f32.mrb[3].mxu1  ;;  %v442_v51 = vrot.slane %v380_v47, %v3211_v42  ;;  %v401_v52 = vcombine.high %v393_v46, %v393_v46  ;;  %v2770_v31 = vpop.f32.mrb[1].mxu0 }
  0xf3   : > { %v409_v57 = vrot.slane %v393_v46, %v3211_v42  ;;  %v3260_v36 = vpop.f32.mrb[2].mxu0 }
  0xf4   : > { %v402_v53 = vcombine.high %v400_v48, %v400_v48  ;;  %v449_v54 = vrot.slane %v435_v49, %v3211_v42  ;;  %v450_v55 = vcombine.high %v442_v51, %v442_v51  ;;  %v416_v58 = vrot.slane %v400_v48, %v3211_v42  ;;  %v2771_v41 = vpop.f32.mrb[3].mxu0 }
  0xf5   : > { %v423_v59 = vrot.slane %v401_v52, %v3211_v42  ;;  %v3224_v61 = vrot.slane %v442_v51, %v3211_v42  ;;  %v431_v3 = vcombine.high %v409_v57, %v409_v57 }
  0xf6   : > { %v451_v56 = vcombine.high %v449_v54, %v449_v54  ;;  %v3221_v60 = vrot.slane %v402_v53, %v3211_v42  ;;  %v3227_v62 = vrot.slane %v449_v54, %v3211_v42  ;;  %v3230_v63 = vrot.slane %v450_v55, %v3211_v42 }
  0xf7   : > { %v432_v8 = vcombine.high %v416_v58, %v416_v58  ;;  %v433_v9 = vcombine.high %v423_v59, %v423_v59  ;;  %v480_v11 = vcombine.high %v3224_v61, %v3224_v61 }
  0xf8   : > { %v3233_v0 = vrot.slane %v451_v56, %v3211_v42  ;;  %v434_v10 = vcombine.high %v3221_v60, %v3221_v60  ;;  %v481_v18 = vcombine.high %v3227_v62, %v3227_v62  ;;  %v482_v19 = vcombine.high %v3230_v63, %v3230_v63 }
  0xfa   : > { %v483_v20 = vcombine.high %v3233_v0, %v3233_v0 }
  0xfb   : > { %v558_v2 = vpop.f32.mrb[4].mxu1 }
  0xfc   : > { %v567_v4 = vcombine.high %v558_v2, %v558_v2  ;;  %v574_v5 = vrot.slane %v558_v2, %v3211_v42  ;;  %v2720_v7 = vpop.f32.mrb[5].mxu1 }
  0xfd   : > { %v561_v12 = vpop.f32.mrb[6].mxu1 }
  0xfe   : > { %v581_v13 = vrot.slane %v567_v4, %v3211_v42  ;;  %v582_v14 = vcombine.high %v574_v5, %v574_v5  ;;  %v590_v15 = vrot.slane %v574_v5, %v3211_v42  ;;  %v616_v16 = vcombine.high %v561_v12, %v561_v12  ;;  %v2721_v17 = vpop.f32.mrb[7].mxu1 }
  0xff   : > { %v623_v21 = vrot.slane %v561_v12, %v3211_v42 }
 0x100   : > { %v583_v22 = vcombine.high %v581_v13, %v581_v13  ;;  %v597_v23 = vrot.slane %v581_v13, %v3211_v42  ;;  %v604_v24 = vrot.slane %v582_v14, %v3211_v42  ;;  %v612_v25 = vcombine.high %v590_v15, %v590_v15 }
 0x101   : > { %v1658_v27 = vrot.slane %v590_v15, %v3236_v6  ;;  %v630_v28 = vrot.slane %v616_v16, %v3211_v42  ;;  %v631_v29 = vcombine.high %v623_v21, %v623_v21  ;;  %v639_v30 = vrot.slane %v623_v21, %v3211_v42 }
 0x102   : > { %v611_v32 = vrot.slane %v583_v22, %v3211_v42  ;;  %v613_v33 = vcombine.high %v597_v23, %v597_v23  ;;  %v614_v34 = vcombine.high %v604_v24, %v604_v24  ;;  %v1662_v35 = vrot.slane %v604_v24, %v3236_v6 }
 0x103   : > { %v1666_v37 = vrot.slane %v612_v25, %v3236_v6  ;;  %v1674_v38 = vrot.slane %v597_v23, %v3236_v6  ;;  %v3265_v39 = vsel %vm337_vm0, %v409_v57, %v1658_v27  ;;  %v632_v40 = vcombine.high %v630_v28, %v630_v28 }
 0x104   : > { %v615_v43 = vcombine.high %v611_v32, %v611_v32  ;;  %v1670_v44 = vrot.slane %v614_v34, %v3236_v6  ;;  %v1678_v45 = vrot.slane %v611_v32, %v3236_v6  ;;  %v1682_v46 = vrot.slane %v613_v33, %v3236_v6 }
 0x105   : > { %v3271_v47 = vsel %vm337_vm0, %v423_v59, %v1662_v35  ;;  %v3274_v48 = vsel %vm337_vm0, %v431_v3, %v1666_v37  ;;  %v3277_v49 = vsel %vm337_vm0, %v416_v58, %v1674_v38  ;;  %v646_v50 = vrot.slane %v630_v28, %v3211_v42 }
 0x106   : > { %v1686_v51 = vrot.slane %v615_v43, %v3236_v6  ;;  %v3282_v52 = vsel %vm337_vm0, %v433_v9, %v1670_v44  ;;  %v3286_v53 = vsel %vm337_vm0, %v3221_v60, %v1678_v45  ;;  %v3289_v54 = vsel %vm337_vm0, %v432_v8, %v1682_v46 }
 0x107   : > { %v653_v55 = vrot.slane %v631_v29, %v3211_v42  ;;  %v660_v56 = vrot.slane %v632_v40, %v3211_v42  ;;  %v661_v57 = vcombine.high %v639_v30, %v639_v30  ;;  %v662_v58 = vcombine.high %v646_v50, %v646_v50  ;;  %v723_v59 = vpop.f32.mrb[8].mxu1 }
 0x108   : > { %v3294_v2 = vsel %vm337_vm0, %v434_v10, %v1686_v51  ;;  %v1690_v3 = vrot.slane %v639_v30, %v3236_v6  ;;  %v1706_v4 = vrot.slane %v646_v50, %v3236_v6  ;;  %v732_v5 = vcombine.high %v723_v59, %v723_v59  ;;  %v2730_v60 = vpop.f32.mrb[9].mxu1 }
 0x109   : > { %v663_v7 = vcombine.high %v653_v55, %v653_v55  ;;  %v664_v8 = vcombine.high %v660_v56, %v660_v56  ;;  %v1694_v9 = vrot.slane %v653_v55, %v3236_v6  ;;  %v1698_v12 = vrot.slane %v661_v57, %v3236_v6  ;;  %v726_v13 = vpop.f32.mrb[10].mxu1 }
 0x10a   : > { %v1710_v14 = vrot.slane %v660_v56, %v3236_v6  ;;  %v1714_v15 = vrot.slane %v662_v58, %v3236_v6  ;;  %v3304_v10 = vsel %vm337_vm0, %v3224_v61, %v1690_v3  ;;  %v3308_v16 = vsel %vm337_vm0, %v3227_v62, %v1706_v4  ;;  %v2731_v17 = vpop.f32.mrb[11].mxu1 }
 0x10b   : > { %v1702_v21 = vrot.slane %v663_v7, %v3236_v6  ;;  %v1718_v22 = vrot.slane %v664_v8, %v3236_v6  ;;  %v3314_v23 = vsel %vm337_vm0, %v3230_v63, %v1694_v9  ;;  %v3320_v24 = vsel %vm337_vm0, %v480_v11, %v1698_v12 }
 0x10c   : > { %v3324_v25 = vsel %vm337_vm0, %v3233_v0, %v1710_v14  ;;  %v3330_v27 = vsel %vm337_vm0, %v481_v18, %v1714_v15  ;;  %v739_v28 = vrot.slane %v723_v59, %v3211_v42  ;;  %v746_v29 = vrot.slane %v732_v5, %v3211_v42 }
 0x10d   : > { %v2226_v61 = vsel %vm337_vm0, %v482_v19, %v1702_v21  ;;  %v2230_v11 = vsel %vm337_vm0, %v483_v20, %v1718_v22  ;;  %v781_v30 = vcombine.high %v726_v13, %v726_v13  ;;  %v788_v62 = vrot.slane %v726_v13, %v3211_v42 }
 0x10e   : > { %v747_v31 = vcombine.high %v739_v28, %v739_v28  ;;  %v748_v18 = vcombine.high %v746_v29, %v746_v29  ;;  %v755_v32 = vrot.slane %v739_v28, %v3211_v42  ;;  %v762_v33 = vrot.slane %v746_v29, %v3211_v42 }
 0x10f   : > { %v795_v34 = vrot.slane %v781_v30, %v3211_v42  ;;  %v796_v35 = vcombine.high %v788_v62, %v788_v62  ;;  %v804_v63 = vrot.slane %v788_v62, %v3211_v42  ;;  %v1392_v19 = vcombine.high %v3253_v26, %v3253_v26 }
 0x110   : > { %v769_v0 = vrot.slane %v747_v31, %v3211_v42  ;;  %v776_v20 = vrot.slane %v748_v18, %v3211_v42  ;;  %v777_v37 = vcombine.high %v755_v32, %v755_v32  ;;  %v778_v38 = vcombine.high %v762_v33, %v762_v33 }
 0x111   : > { %v1738_v40 = vrot.slane %v755_v32, %v3236_v6  ;;  %v1754_v41 = vrot.slane %v762_v33, %v3236_v6  ;;  %v797_v43 = vcombine.high %v795_v34, %v795_v34  ;;  %v811_v44 = vrot.slane %v795_v34, %v3211_v42 }
 0x112   : > { %v779_v45 = vcombine.high %v769_v0, %v769_v0  ;;  %v780_v46 = vcombine.high %v776_v20, %v776_v20  ;;  %v1742_v50 = vrot.slane %v769_v0, %v3236_v6  ;;  %v1746_v51 = vrot.slane %v777_v37, %v3236_v6 }
 0x113   : > { %v1758_v55 = vrot.slane %v776_v20, %v3236_v6  ;;  %v1762_v56 = vrot.slane %v778_v38, %v3236_v6  ;;  %v3360_v57 = vsel %vm2231_vm4, %v3265_v39, %v1738_v40  ;;  %v3364_v58 = vsel %vm2231_vm4, %v3277_v49, %v1754_v41  ;;  %v888_v59 = vpop.f32.mrb[12].mxu1 }
 0x114   : > { %v1750_v3 = vrot.slane %v779_v45, %v3236_v6  ;;  %v1766_v4 = vrot.slane %v780_v46, %v3236_v6  ;;  %v3370_v5 = vsel %vm2231_vm4, %v3271_v47, %v1742_v50  ;;  %v3374_v60 = vsel %vm2231_vm4, %v3274_v48, %v1746_v51  ;;  %v2740_v7 = vpop.f32.mrb[13].mxu1 }
 0x115   : > { %v3378_v39 = vsel %vm2231_vm4, %v3286_v53, %v1758_v55  ;;  %v3382_v49 = vsel %vm2231_vm4, %v3289_v54, %v1762_v56  ;;  %v818_v8 = vrot.slane %v796_v35, %v3211_v42  ;;  %v825_v9 = vrot.slane %v797_v43, %v3211_v42  ;;  %v891_v12 = vpop.f32.mrb[14].mxu1 }
 0x116   : > { %v3388_v47 = vsel %vm2231_vm4, %v3282_v52, %v1750_v3  ;;  %v3392_v48 = vsel %vm2231_vm4, %v3294_v2, %v1766_v4  ;;  %v826_v13 = vcombine.high %v804_v63, %v804_v63  ;;  %v827_v53 = vcombine.high %v811_v44, %v811_v44  ;;  %v2741_v14 = vpop.f32.mrb[15].mxu1 }
 0x117   : > { %v828_v15 = vcombine.high %v818_v8, %v818_v8  ;;  %v829_v17 = vcombine.high %v825_v9, %v825_v9  ;;  %v1770_v54 = vrot.slane %v804_v63, %v3236_v6  ;;  %v1774_v21 = vrot.slane %v818_v8, %v3236_v6 }
 0x118   : > { %v1778_v22 = vrot.slane %v826_v13, %v3236_v6  ;;  %v1786_v28 = vrot.slane %v811_v44, %v3236_v6  ;;  %v1790_v52 = vrot.slane %v825_v9, %v3236_v6  ;;  %v1794_v29 = vrot.slane %v827_v53, %v3236_v6 }
 0x119   : > { %v1782_v2 = vrot.slane %v828_v15, %v3236_v6  ;;  %v1798_v30 = vrot.slane %v829_v17, %v3236_v6  ;;  %v3404_v62 = vsel %vm2231_vm4, %v3304_v10, %v1770_v54  ;;  %v3408_v31 = vsel %vm2231_vm4, %v3314_v23, %v1774_v21 }
 0x11a   : > { %v3412_v18 = vsel %vm2231_vm4, %v3320_v24, %v1778_v22  ;;  %v3416_v32 = vsel %vm2231_vm4, %v3308_v16, %v1786_v28  ;;  %v3420_v33 = vsel %vm2231_vm4, %v3324_v25, %v1790_v52  ;;  %v3424_v10 = vsel %vm2231_vm4, %v3330_v27, %v1794_v29 }
 0x11b   : > { %v3427_v34 = vsel %vm2231_vm4, %v2226_v61, %v1782_v2  ;;  %v3430_v23 = vsel %vm2231_vm4, %v2230_v11, %v1798_v30  ;;  %v897_v24 = vcombine.high %v888_v59, %v888_v59  ;;  %v904_v35 = vrot.slane %v888_v59, %v3211_v42 }
 0x11c   : > { %v946_v63 = vcombine.high %v891_v12, %v891_v12  ;;  %v953_v16 = vrot.slane %v891_v12, %v3211_v42  ;;  %v3436_v25 = vrot.slane %v3253_v26, %v3211_v42  ;;  %v3439_v0 = vrot.slane %v1392_v19, %v3211_v42 }
 0x11d   : > { %v911_v27 = vrot.slane %v897_v24, %v3211_v42  ;;  %v912_v61 = vcombine.high %v904_v35, %v904_v35  ;;  %v920_v20 = vrot.slane %v904_v35, %v3211_v42  ;;  %v1441_v11 = vcombine.high %v3260_v36, %v3260_v36 }
 0x11e   : > { %v960_v37 = vrot.slane %v946_v63, %v3211_v42  ;;  %v961_v38 = vcombine.high %v953_v16, %v953_v16  ;;  %v969_v40 = vrot.slane %v953_v16, %v3211_v42  ;;  %v1407_v26 = vcombine.high %v3436_v25, %v3436_v25 }
 0x11f   : > { %v913_v41 = vcombine.high %v911_v27, %v911_v27  ;;  %v927_v19 = vrot.slane %v911_v27, %v3211_v42  ;;  %v934_v43 = vrot.slane %v912_v61, %v3211_v42  ;;  %v942_v44 = vcombine.high %v920_v20, %v920_v20  ;;  %v1053_v45 = vpop.f32.mrb[16].mxu1 }
 0x120   : > { %v1818_v46 = vrot.slane %v920_v20, %v3236_v6  ;;  %v962_v50 = vcombine.high %v960_v37, %v960_v37  ;;  %v976_v51 = vrot.slane %v960_v37, %v3211_v42  ;;  %v983_v55 = vrot.slane %v961_v38, %v3211_v42  ;;  %v2750_v56 = vpop.f32.mrb[17].mxu1 }
 0x121   : > { %v941_v59 = vrot.slane %v913_v41, %v3211_v42  ;;  %v943_v3 = vcombine.high %v927_v19, %v927_v19  ;;  %v944_v4 = vcombine.high %v934_v43, %v934_v43  ;;  %v1822_v7 = vrot.slane %v934_v43, %v3236_v6  ;;  %v1056_v8 = vpop.f32.mrb[18].mxu1 }
 0x122   : > { %v1826_v9 = vrot.slane %v942_v44, %v3236_v6  ;;  %v1834_v12 = vrot.slane %v927_v19, %v3236_v6  ;;  %v3467_v13 = vsel %vm2248_vm5, %v3360_v57, %v1818_v46  ;;  %v990_v53 = vrot.slane %v962_v50, %v3211_v42  ;;  %v2751_v14 = vpop.f32.mrb[19].mxu1 }
 0x123   : > { %v945_v15 = vcombine.high %v941_v59, %v941_v59  ;;  %v1830_v17 = vrot.slane %v944_v4, %v3236_v6  ;;  %v1838_v54 = vrot.slane %v941_v59, %v3236_v6  ;;  %v1842_v21 = vrot.slane %v943_v3, %v3236_v6 }
 0x124   : > { %v3475_v22 = vsel %vm2248_vm5, %v3370_v5, %v1822_v7  ;;  %v3479_v28 = vsel %vm2248_vm5, %v3374_v60, %v1826_v9  ;;  %v3483_v57 = vsel %vm2248_vm5, %v3364_v58, %v1834_v12  ;;  %v991_v52 = vcombine.high %v969_v40, %v969_v40 }
 0x125   : > { %v1846_v29 = vrot.slane %v945_v15, %v3236_v6  ;;  %v3488_v2 = vsel %vm2248_vm5, %v3388_v47, %v1830_v17  ;;  %v3492_v30 = vsel %vm2248_vm5, %v3378_v39, %v1838_v54  ;;  %v3496_v5 = vsel %vm2248_vm5, %v3382_v49, %v1842_v21 }
 0x126   : > { %v992_v60 = vcombine.high %v976_v51, %v976_v51  ;;  %v993_v24 = vcombine.high %v983_v55, %v983_v55  ;;  %v994_v35 = vcombine.high %v990_v53, %v990_v53  ;;  %v1850_v58 = vrot.slane %v969_v40, %v3236_v6 }
 0x127   : > { %v3501_v63 = vsel %vm2248_vm5, %v3392_v48, %v1846_v29  ;;  %v1854_v47 = vrot.slane %v983_v55, %v3236_v6  ;;  %v1858_v16 = vrot.slane %v991_v52, %v3236_v6  ;;  %v1866_v39 = vrot.slane %v976_v51, %v3236_v6 }
 0x128   : > { %v1862_v27 = vrot.slane %v993_v24, %v3236_v6  ;;  %v1870_v49 = vrot.slane %v990_v53, %v3236_v6  ;;  %v1874_v61 = vrot.slane %v992_v60, %v3236_v6  ;;  %v1878_v20 = vrot.slane %v994_v35, %v3236_v6 }
 0x129   : > { %v3512_v37 = vsel %vm2248_vm5, %v3404_v62, %v1850_v58  ;;  %v3516_v48 = vsel %vm2248_vm5, %v3408_v31, %v1854_v47  ;;  %v3520_v38 = vsel %vm2248_vm5, %v3412_v18, %v1858_v16  ;;  %v3524_v40 = vsel %vm2248_vm5, %v3416_v32, %v1866_v39 }
 0x12a   : > { %v3528_v41 = vsel %vm2248_vm5, %v3427_v34, %v1862_v27  ;;  %v3532_v62 = vsel %vm2248_vm5, %v3420_v33, %v1870_v49  ;;  %v3536_v31 = vsel %vm2248_vm5, %v3424_v10, %v1874_v61  ;;  %v3540_v18 = vsel %vm2248_vm5, %v3430_v23, %v1878_v20 }
 0x12b   : > { %v1062_v19 = vcombine.high %v1053_v45, %v1053_v45  ;;  %v1069_v32 = vrot.slane %v1053_v45, %v3211_v42  ;;  %v1111_v43 = vcombine.high %v1056_v8, %v1056_v8  ;;  %v1118_v44 = vrot.slane %v1056_v8, %v3211_v42  ;;  %v1218_v34 = vpop.f32.mrb[20].mxu1 }
 0x12c   : > { %v1227_v46 = vcombine.high %v1218_v34, %v1218_v34  ;;  %v3545_v50 = vrot.slane %v1218_v34, %v3211_v42  ;;  %v2760_v33 = vpop.f32.mrb[21].mxu1  ;;  %v1408_v10 = vcombine.high %v3439_v0, %v3439_v0  ;;  %v3551_v51 = vrot.slane %v3436_v25, %v3211_v42 }
 0x12d   : > { %v1076_v23 = vrot.slane %v1062_v19, %v3211_v42  ;;  %v1077_v55 = vcombine.high %v1069_v32, %v1069_v32  ;;  %v1085_v45 = vrot.slane %v1069_v32, %v3211_v42  ;;  %v1125_v56 = vrot.slane %v1111_v43, %v3211_v42  ;;  %v3556_v59 = vpop.f32.mrb[22].mxu1 }
 0x12e   : > { %v1126_v3 = vcombine.high %v1118_v44, %v1118_v44  ;;  %v1134_v4 = vrot.slane %v1118_v44, %v3211_v42  ;;  %v3560_v7 = vrot.slane %v1227_v46, %v3211_v42  ;;  %v1242_v8 = vcombine.high %v3545_v50, %v3545_v50  ;;  %v2761_v9 = vpop.f32.mrb[23].mxu1 }
 0x12f   : > { %v1078_v12 = vcombine.high %v1076_v23, %v1076_v23  ;;  %v1092_v53 = vrot.slane %v1076_v23, %v3211_v42  ;;  %v1099_v14 = vrot.slane %v1077_v55, %v3211_v42  ;;  %v1107_v15 = vcombine.high %v1085_v45, %v1085_v45 }
 0x130   : > { %v1898_v17 = vrot.slane %v1085_v45, %v3236_v6  ;;  %v1127_v54 = vcombine.high %v1125_v56, %v1125_v56  ;;  %v1141_v21 = vrot.slane %v1125_v56, %v3211_v42  ;;  %v1148_v52 = vrot.slane %v1126_v3, %v3211_v42 }
 0x131   : > { %v1106_v29 = vrot.slane %v1078_v12, %v3211_v42  ;;  %v1108_v60 = vcombine.high %v1092_v53, %v1092_v53  ;;  %v1109_v24 = vcombine.high %v1099_v14, %v1099_v14  ;;  %v1902_v35 = vrot.slane %v1099_v14, %v3236_v6 }
 0x132   : > { %v1906_v58 = vrot.slane %v1107_v15, %v3236_v6  ;;  %v1914_v47 = vrot.slane %v1092_v53, %v3236_v6  ;;  %v2266_v16 = vsel %vm2265_vm6, %v3467_v13, %v1898_v17  ;;  %v1155_v39 = vrot.slane %v1127_v54, %v3211_v42 }
 0x133   : > { %v1110_v27 = vcombine.high %v1106_v29, %v1106_v29  ;;  %v1910_v49 = vrot.slane %v1109_v24, %v3236_v6  ;;  %v1918_v61 = vrot.slane %v1106_v29, %v3236_v6  ;;  %v1922_v20 = vrot.slane %v1108_v60, %v3236_v6 }
 0x134   : > { %v2267_v19 = vsel %vm2265_vm6, %v3475_v22, %v1902_v35  ;;  %v2268_v32 = vsel %vm2265_vm6, %v3479_v28, %v1906_v58  ;;  %v2270_v43 = vsel %vm2265_vm6, %v3483_v57, %v1914_v47  ;;  %v1156_v44 = vcombine.high %v1134_v4, %v1134_v4 }
 0x135   : > { %v1926_v13 = vrot.slane %v1110_v27, %v3236_v6  ;;  %v2269_v34 = vsel %vm2265_vm6, %v3488_v2, %v1910_v49  ;;  %v2271_v46 = vsel %vm2265_vm6, %v3492_v30, %v1918_v61  ;;  %v2272_v33 = vsel %vm2265_vm6, %v3496_v5, %v1922_v20 }
 0x136   : > { %v1157_v22 = vcombine.high %v1141_v21, %v1141_v21  ;;  %v1158_v23 = vcombine.high %v1148_v52, %v1148_v52  ;;  %v1159_v55 = vcombine.high %v1155_v39, %v1155_v39  ;;  %v1930_v28 = vrot.slane %v1134_v4, %v3236_v6 }
 0x137   : > { %v2273_v57 = vsel %vm2265_vm6, %v3501_v63, %v1926_v13  ;;  %v1934_v45 = vrot.slane %v1148_v52, %v3236_v6  ;;  %v1938_v56 = vrot.slane %v1156_v44, %v3236_v6  ;;  %v1946_v2 = vrot.slane %v1141_v21, %v3236_v6  ;;  %v3598_v3 = vpop.f32.mrb[24].mxu1 }
 0x138   : > { %v1942_v30 = vrot.slane %v1158_v23, %v3236_v6  ;;  %v1950_v5 = vrot.slane %v1155_v39, %v3236_v6  ;;  %v1954_v9 = vrot.slane %v1157_v22, %v3236_v6  ;;  %v1958_v12 = vrot.slane %v1159_v55, %v3236_v6  ;;  %v2780_v4 = vpop.f32.mrb[25].mxu1 }
 0x139   : > { %v3606_v63 = vsel %vm2265_vm6, %v3512_v37, %v1930_v28  ;;  %v3610_v53 = vsel %vm2265_vm6, %v3516_v48, %v1934_v45  ;;  %v3614_v14 = vsel %vm2265_vm6, %v3520_v38, %v1938_v56  ;;  %v3618_v15 = vsel %vm2265_vm6, %v3524_v40, %v1946_v2  ;;  %v3620_v17 = vpop.f32.mrb[26].mxu1 }
 0x13a   : > { %v3624_v54 = vsel %vm2265_vm6, %v3528_v41, %v1942_v30  ;;  %v3628_v37 = vsel %vm2265_vm6, %v3532_v62, %v1950_v5  ;;  %v3632_v48 = vsel %vm2265_vm6, %v3536_v31, %v1954_v9  ;;  %v3636_v38 = vsel %vm2265_vm6, %v3540_v18, %v1958_v12  ;;  %v2781_v40 = vpop.f32.mrb[27].mxu1 }
 0x13b   : > { %v1243_v21 = vcombine.high %v3560_v7, %v3560_v7  ;;  %v1250_v41 = vrot.slane %v3545_v50, %v3211_v42  ;;  %v1257_v62 = vrot.slane %v3560_v7, %v3211_v42  ;;  %v1264_v52 = vrot.slane %v1242_v8, %v3211_v42 }
 0x13c   : > { %v1422_v31 = vrot.slane %v3439_v0, %v3211_v42  ;;  %v1429_v18 = vrot.slane %v1407_v26, %v3211_v42  ;;  %v1436_v29 = vrot.slane %v1408_v10, %v3211_v42  ;;  %v1437_v50 = vcombine.high %v3551_v51, %v3551_v51 }
 0x13d   : > { %v1271_v7 = vrot.slane %v1243_v21, %v3211_v42  ;;  %v1272_v60 = vcombine.high %v1250_v41, %v1250_v41  ;;  %v1273_v8 = vcombine.high %v1257_v62, %v1257_v62  ;;  %v1274_v24 = vcombine.high %v1264_v52, %v1264_v52 }
 0x13e   : > { %v1978_v35 = vrot.slane %v1250_v41, %v3236_v6  ;;  %v1982_v58 = vrot.slane %v1264_v52, %v3236_v6  ;;  %v1994_v25 = vrot.slane %v1257_v62, %v3236_v6  ;;  %v1438_v26 = vcombine.high %v1422_v31, %v1422_v31 }
 0x13f   : > { %v1275_v47 = vcombine.high %v1271_v7, %v1271_v7  ;;  %v1986_v39 = vrot.slane %v1272_v60, %v3236_v6  ;;  %v1990_v0 = vrot.slane %v1274_v24, %v3236_v6  ;;  %v1998_v10 = vrot.slane %v1271_v7, %v3236_v6 }
 0x140   : > { %v2002_v27 = vrot.slane %v1273_v8, %v3236_v6  ;;  %v2283_v49 = vsel %vm2282_vm7, %v2266_v16, %v1978_v35  ;;  %v2284_v61 = vsel %vm2282_vm7, %v2267_v19, %v1982_v58  ;;  %v2287_v20 = vsel %vm2282_vm7, %v2270_v43, %v1994_v25 }
 0x141   : > { %v2006_v44 = vrot.slane %v1275_v47, %v3236_v6  ;;  %v2285_v13 = vsel %vm2282_vm7, %v2268_v32, %v1986_v39  ;;  %v2286_v22 = vsel %vm2282_vm7, %v2269_v34, %v1990_v0  ;;  %v2288_v23 = vsel %vm2282_vm7, %v2271_v46, %v1998_v10 }
 0x142   : > { %v2289_v55 = vsel %vm2282_vm7, %v2272_v33, %v2002_v27  ;;  %v1439_v28 = vcombine.high %v1429_v18, %v1429_v18  ;;  %v1440_v45 = vcombine.high %v1436_v29, %v1436_v29  ;;  %v2058_v56 = vrot.slane %v3551_v51, %v3236_v6 }
 0x143   : > { %v2290_v16 = vsel %vm2282_vm7, %v2273_v57, %v2006_v44  ;;  %v2062_v19 = vrot.slane %v1429_v18, %v3236_v6  ;;  %v2066_v43 = vrot.slane %v1437_v50, %v3236_v6  ;;  %v2074_v2 = vrot.slane %v1422_v31, %v3236_v6 }
 0x144   : > { %v2070_v32 = vrot.slane %v1439_v28, %v3236_v6  ;;  %v2078_v34 = vrot.slane %v1436_v29, %v3236_v6  ;;  %v2082_v46 = vrot.slane %v1438_v26, %v3236_v6  ;;  %v2086_v33 = vrot.slane %v1440_v45, %v3236_v6 }
 0x145   : > { %v3684_v30 = vsel %vm2299_vm8, %v2283_v49, %v2058_v56  ;;  %v3687_v51 = vsel %vm2299_vm8, %v2284_v61, %v2062_v19  ;;  %v3690_v57 = vsel %vm2299_vm8, %v2285_v13, %v2066_v43  ;;  %v3693_v5 = vsel %vm2299_vm8, %v2287_v20, %v2074_v2 }
 0x146   : > { %v3696_v9 = vsel %vm2299_vm8, %v2286_v22, %v2070_v32  ;;  %v3699_v12 = vsel %vm2299_vm8, %v2288_v23, %v2078_v34  ;;  %v3702_v4 = vsel %vm2299_vm8, %v2289_v55, %v2082_v46  ;;  %v3705_v40 = vsel %vm2299_vm8, %v2290_v16, %v2086_v33 }
 0x147   : > { %v1276_v21 = vcombine.high %v3556_v59, %v3556_v59  ;;  %v1283_v41 = vrot.slane %v3556_v59, %v3211_v42  ;;  %v1448_v62 = vrot.slane %v3260_v36, %v3211_v42  ;;  %v1455_v52 = vrot.slane %v1441_v11, %v3211_v42 }
 0x148   : > { %v1557_v31 = vcombine.high %v3598_v3, %v3598_v3  ;;  %v3721_v18 = vrot.slane %v3598_v3, %v3211_v42  ;;  %v1606_v29 = vcombine.high %v3620_v17, %v3620_v17  ;;  %v3727_v59 = vrot.slane %v3620_v17, %v3211_v42 }
 0x149   : > { %v1290_v50 = vrot.slane %v1276_v21, %v3211_v42  ;;  %v1291_v7 = vcombine.high %v1283_v41, %v1283_v41  ;;  %v1299_v36 = vrot.slane %v1283_v41, %v3211_v42  ;;  %v1456_v11 = vcombine.high %v1448_v62, %v1448_v62 }
 0x14a   : > { %v1457_v60 = vcombine.high %v1455_v52, %v1455_v52  ;;  %v1464_v8 = vrot.slane %v1448_v62, %v3211_v42  ;;  %v1471_v24 = vrot.slane %v1455_v52, %v3211_v42  ;;  %v1571_v3 = vrot.slane %v1557_v31, %v3211_v42 }
 0x14b   : > { %v1292_v35 = vcombine.high %v1290_v50, %v1290_v50  ;;  %v1306_v58 = vrot.slane %v1290_v50, %v3211_v42  ;;  %v1313_v25 = vrot.slane %v1291_v7, %v3211_v42  ;;  %v1321_v17 = vcombine.high %v1299_v36, %v1299_v36 }
 0x14c   : > { %v2010_v26 = vrot.slane %v1299_v36, %v3236_v6  ;;  %v1478_v47 = vrot.slane %v1456_v11, %v3211_v42  ;;  %v1485_v39 = vrot.slane %v1457_v60, %v3211_v42  ;;  %v1486_v0 = vcombine.high %v1464_v8, %v1464_v8 }
 0x14d   : > { %v1320_v10 = vrot.slane %v1292_v35, %v3211_v42  ;;  %v1322_v27 = vcombine.high %v1306_v58, %v1306_v58  ;;  %v1323_v49 = vcombine.high %v1313_v25, %v1313_v25  ;;  %v2014_v61 = vrot.slane %v1313_v25, %v3236_v6 }
 0x14e   : > { %v2018_v20 = vrot.slane %v1321_v17, %v3236_v6  ;;  %v2026_v44 = vrot.slane %v1306_v58, %v3236_v6  ;;  %v2291_v13 = vsel %vm2282_vm7, %v3606_v63, %v2010_v26  ;;  %v1487_v22 = vcombine.high %v1471_v24, %v1471_v24 }
 0x14f   : > { %v1324_v23 = vcombine.high %v1320_v10, %v1320_v10  ;;  %v2022_v55 = vrot.slane %v1323_v49, %v3236_v6  ;;  %v2030_v28 = vrot.slane %v1320_v10, %v3236_v6  ;;  %v2034_v45 = vrot.slane %v1322_v27, %v3236_v6 }
 0x150   : > { %v2292_v56 = vsel %vm2282_vm7, %v3610_v53, %v2014_v61  ;;  %v2293_v16 = vsel %vm2282_vm7, %v3614_v14, %v2018_v20  ;;  %v2295_v19 = vsel %vm2282_vm7, %v3618_v15, %v2026_v44  ;;  %v1488_v43 = vcombine.high %v1478_v47, %v1478_v47 }
 0x151   : > { %v2038_v63 = vrot.slane %v1324_v23, %v3236_v6  ;;  %v2294_v2 = vsel %vm2282_vm7, %v3624_v54, %v2022_v55  ;;  %v2296_v32 = vsel %vm2282_vm7, %v3628_v37, %v2030_v28  ;;  %v2297_v34 = vsel %vm2282_vm7, %v3632_v48, %v2034_v45 }
 0x152   : > { %v1489_v46 = vcombine.high %v1485_v39, %v1485_v39  ;;  %v2090_v53 = vrot.slane %v1464_v8, %v3236_v6  ;;  %v2094_v14 = vrot.slane %v1478_v47, %v3236_v6  ;;  %v2098_v33 = vrot.slane %v1486_v0, %v3236_v6 }
 0x153   : > { %v2298_v15 = vsel %vm2282_vm7, %v3636_v38, %v2038_v63  ;;  %v2102_v21 = vrot.slane %v1488_v43, %v3236_v6  ;;  %v2106_v54 = vrot.slane %v1471_v24, %v3236_v6  ;;  %v2110_v41 = vrot.slane %v1485_v39, %v3236_v6 }
 0x154   : > { %v2114_v37 = vrot.slane %v1487_v22, %v3236_v6  ;;  %v2118_v48 = vrot.slane %v1489_v46, %v3236_v6  ;;  %v2308_v62 = vsel %vm2299_vm8, %v2291_v13, %v2090_v53  ;;  %v2309_v52 = vsel %vm2299_vm8, %v2292_v56, %v2094_v14 }
 0x155   : > { %v2310_v31 = vsel %vm2299_vm8, %v2293_v16, %v2098_v33  ;;  %v3775_v50 = vsel %vm2299_vm8, %v2294_v2, %v2102_v21  ;;  %v2312_v38 = vsel %vm2299_vm8, %v2295_v19, %v2106_v54  ;;  %v2313_v7 = vsel %vm2299_vm8, %v2296_v32, %v2110_v41 }
 0x156   : > { %v2314_v36 = vsel %vm2299_vm8, %v2297_v34, %v2114_v37  ;;  %v3781_v11 = vsel %vm2299_vm8, %v2298_v15, %v2118_v48  ;;  %v1572_v60 = vcombine.high %v3721_v18, %v3721_v18  ;;  %v1573_v8 = vcombine.high %v1571_v3, %v1571_v3 }
 0x157   : > { %v1580_v24 = vrot.slane %v3721_v18, %v3211_v42  ;;  %v1587_v35 = vrot.slane %v1571_v3, %v3211_v42  ;;  %v1620_v58 = vrot.slane %v1606_v29, %v3211_v42  ;;  %v1621_v26 = vcombine.high %v3727_v59, %v3727_v59 }
 0x158   : > { %v1594_v25 = vrot.slane %v1572_v60, %v3211_v42  ;;  %v1601_v17 = vrot.slane %v1573_v8, %v3211_v42  ;;  %v1629_v47 = vrot.slane %v3727_v59, %v3211_v42 }
 0x159   : > { %v1602_v39 = vcombine.high %v1580_v24, %v1580_v24  ;;  %v1603_v0 = vcombine.high %v1587_v35, %v1587_v35  ;;  %v2138_v10 = vrot.slane %v1580_v24, %v3236_v6  ;;  %v2154_v18 = vrot.slane %v1587_v35, %v3236_v6 }
 0x15a   : > { %v1604_v3 = vcombine.high %v1594_v25, %v1594_v25  ;;  %v1605_v27 = vcombine.high %v1601_v17, %v1601_v17  ;;  %v2142_v29 = vrot.slane %v1594_v25, %v3236_v6  ;;  %v2158_v49 = vrot.slane %v1601_v17, %v3236_v6 }
 0x15b   : > { %v2146_v61 = vrot.slane %v1602_v39, %v3236_v6  ;;  %v2162_v20 = vrot.slane %v1603_v0, %v3236_v6  ;;  %v2317_v44 = vsel %vm2316_vm9, %v3684_v30, %v2138_v10  ;;  %v2321_v59 = vsel %vm2316_vm9, %v3693_v5, %v2154_v18 }
 0x15c   : > { %v2150_v13 = vrot.slane %v1604_v3, %v3236_v6  ;;  %v2166_v22 = vrot.slane %v1605_v27, %v3236_v6  ;;  %v2318_v23 = vsel %vm2316_vm9, %v3687_v51, %v2142_v29  ;;  %v2322_v55 = vsel %vm2316_vm9, %v3699_v12, %v2158_v49  ;;  %v2888_v27 = vld [vmem:[%s3459_s22] sm:$0xff]  }
 0x15d   : > { %v2319_v28 = vsel %vm2316_vm9, %v3690_v57, %v2146_v61  ;;  %v2323_v45 = vsel %vm2316_vm9, %v3702_v4, %v2162_v20  ;;  %v2333_v30 = vpack.c.bf16 %v2318_v23, %v2317_v44  ;;  %v2335_v56 = vpack.c.bf16 %v2322_v55, %v2321_v59  ;;  %v2650_v29 = vld [vmem:[%s295_s30] ss:$0 sm:$0xff] }
 0x15e   : > { %v2320_v5 = vsel %vm2316_vm9, %v3696_v9, %v2150_v13  ;;  %v2324_v16 = vsel %vm2316_vm9, %v3705_v40, %v2166_v22  ;;  %v1622_v19 = vcombine.high %v1620_v58, %v1620_v58  ;;  %v1636_v51 = vrot.slane %v1620_v58, %v3211_v42 }
 0x15f   : > { %v2334_v43 = vpack.c.bf16 %v2320_v5, %v2319_v28  ;;  %v2336_v63 = vpack.c.bf16 %v2324_v16, %v2323_v45  ;;  %2341 = vst.msk [vmem:[#allocation2] sm:$0xff] %vm310_vm2, %v2333_v30  ;;  %2343 = vst.msk [vmem:[#allocation2 + $0x10] sm:$0xff] %vm310_vm2, %v2335_v56  ;;  %v1643_v57 = vrot.slane %v1621_v26, %v3211_v42 }
 0x160   : > { %v1651_v12 = vcombine.high %v1629_v47, %v1629_v47  ;;  %v1650_v4 = vrot.slane %v1622_v19, %v3211_v42  ;;  %v1652_v2 = vcombine.high %v1636_v51, %v1636_v51  ;;  %v2170_v9 = vrot.slane %v1629_v47, %v3236_v6 }
 0x161   : > { %v2186_v32 = vrot.slane %v1636_v51, %v3236_v6  ;;  %2342 = vst.msk [vmem:[#allocation2 + $0x8] sm:$0xff] %vm310_vm2, %v2334_v43  ;;  %2344 = vst.msk [vmem:[#allocation2 + $0x18] sm:$0xff] %vm310_vm2, %v2336_v63  ;;  %v1653_v40 = vcombine.high %v1643_v57, %v1643_v57  ;;  %v2174_v34 = vrot.slane %v1643_v57, %v3236_v6 }
 0x162   : > { %v2178_v46 = vrot.slane %v1651_v12, %v3236_v6  ;;  %v1654_v53 = vcombine.high %v1650_v4, %v1650_v4  ;;  %v2190_v14 = vrot.slane %v1650_v4, %v3236_v6  ;;  %v2194_v33 = vrot.slane %v1652_v2, %v3236_v6 }
 0x163   : > { %v2325_v42 = vsel %vm2316_vm9, %v2308_v62, %v2170_v9  ;;  %v2182_v15 = vrot.slane %v1653_v40, %v3236_v6  ;;  %v2326_v21 = vsel %vm2316_vm9, %v2309_v52, %v2174_v34  ;;  %v2329_v41 = vsel %vm2316_vm9, %v2312_v38, %v2186_v32 }
 0x164   : > { %v2327_v54 = vsel %vm2316_vm9, %v2310_v31, %v2178_v46  ;;  %v2198_v37 = vrot.slane %v1654_v53, %v3236_v6  ;;  %v2330_v48 = vsel %vm2316_vm9, %v2313_v7, %v2190_v14  ;;  %v2331_v60 = vsel %vm2316_vm9, %v2314_v36, %v2194_v33 }
 0x165   : > { %v2337_v8 = vpack.c.bf16 %v2326_v21, %v2325_v42  ;;  %v2328_v24 = vsel %vm2316_vm9, %v3775_v50, %v2182_v15  ;;  %v2339_v35 = vpack.c.bf16 %v2330_v48, %v2329_v41 }
 0x166   : > { %v2332_v62 = vsel %vm2316_vm9, %v3781_v11, %v2198_v37  ;;  %v2338_v58 = vpack.c.bf16 %v2328_v24, %v2327_v54  ;;  %v2351_v52 = vld [vmem:[#allocation2] sm:$0xff]  ;;  %v2353_v7 = vld [vmem:[#allocation2 + $0x10] sm:$0xff] }
 0x167   : > { %2345 = vst.msk [vmem:[#allocation2 + $0x20] sm:$0xff] %vm310_vm2, %v2337_v8  ;;  %v2340_v31 = vpack.c.bf16 %v2332_v62, %v2331_v60  ;;  %2347 = vst.msk [vmem:[#allocation2 + $0x30] sm:$0xff] %vm310_vm2, %v2339_v35  ;;  %v2376_v6 = vsel %vm310_vm2, %v2351_v52, 0  ;;  %v2382_v36 = vsel %vm310_vm2, %v2353_v7, 0 }
 0x168   : > { %2346 = vst.msk [vmem:[#allocation2 + $0x28] sm:$0xff] %vm310_vm2, %v2338_v58  ;;  %2783 = vmatpush3.bf16.xpose.msra.mxu0 %v2376_v6  ;;  %v2352_v50 = vld [vmem:[#allocation2 + $0x8] sm:$0xff]  ;;  %v2354_v11 = vld [vmem:[#allocation2 + $0x18] sm:$0xff] }
 0x169   : > { %2348 = vst.msk [vmem:[#allocation2 + $0x38] sm:$0xff] %vm310_vm2, %v2340_v31  ;;  %2784 = vmatprep.subr.bf16.mxu0 %v2969_v1  ;;  %v2379_v38 = vsel %vm310_vm2, %v2352_v50, 0  ;;  %v2385_v25 = vsel %vm310_vm2, %v2354_v11, 0 }
 0x16e   : > { %v2355_v17 = vld [vmem:[#allocation2 + $0x20] sm:$0xff]  ;;  %v2357_v0 = vld [vmem:[#allocation2 + $0x30] sm:$0xff] }
 0x16f   : > { %v2388_v26 = vsel %vm310_vm2, %v2355_v17, 0  ;;  %v2356_v47 = vld [vmem:[#allocation2 + $0x28] sm:$0xff]  ;;  %v2394_v10 = vsel %vm310_vm2, %v2357_v0, 0 }
 0x170   : > { %2785 = vmatpush3.bf16.xpose.msra.mxu0 %v2379_v38  ;;  %v2391_v39 = vsel %vm310_vm2, %v2356_v47, 0  ;;  %v2358_v18 = vld [vmem:[#allocation2 + $0x38] sm:$0xff] }
 0x171   : > { %2786 = vmatprep.subr.bf16.mxu0 %v2969_v1  ;;  %v2397_v3 = vsel %vm310_vm2, %v2358_v18, 0 }
 0x178   : > { %2787 = vmatpush3.bf16.xpose.msra.mxu0 %v2382_v36 }
 0x179   : > { %2788 = vmatprep.subr.bf16.mxu0 %v2969_v1 }
 0x180   : > { %2789 = vmatpush3.bf16.xpose.msra.mxu0 %v2385_v25 }
 0x181   : > { %2790 = vmatprep.subr.bf16.mxu0 %v2969_v1 }
 0x188   : > { %2791 = vmatpush3.bf16.xpose.msra.mxu0 %v2388_v26 }
 0x189   : > { %2792 = vmatprep.subr.bf16.mxu0 %v2969_v1 }
 0x190   : > { %2793 = vmatpush3.bf16.xpose.msra.mxu0 %v2391_v39 }
 0x191   : > { %2794 = vmatprep.subr.bf16.mxu0 %v2969_v1 }
 0x198   : > { %2795 = vmatpush3.bf16.xpose.msra.mxu0 %v2394_v10 }
 0x199   : > { %2796 = vmatprep.subr.bf16.mxu0 %v2969_v1 }
 0x1a0   : > { %2797 = vmatpush3.bf16.xpose.msra.mxu0 %v2397_v3 }
 0x1a7   : > { %2799 = vmatmul.mubr.msk.bf16.vlgmr.msra.gmra.mrb[4].mxu0 %vm310_vm2, %v2888_v27 }
 0x27a   : > { %v2433_v49 = vpop.f32.mrb[4].mxu0 }
 0x27b   : > { %v2434_v1 = vadd.f32 %v2650_v29, %v2433_v49  ;;  %v2800_v61 = vpop.f32.mrb[5].mxu0 }
 0x27c   : > { %v2436_v20 = vpop.f32.mrb[6].mxu0 }
 0x27d   : > { %2440 = vst [vmem:[%s269_s5] sm:$0xff] %v2434_v1  ;;  %v2437_v44 = vadd.f32 %v2650_v29, %v2436_v20  ;;  %v2801_v59 = vpop.f32.mrb[7].mxu0 }
 0x27f   : > { %2441 = vst [vmem:[%s269_s5 + $0x8] sm:$0xff] %v2437_v44 }
 0x280   : > { %2902 = shalt.err (!%p2899_p5)
}
 0x281   : > { %s2903_s22 = scalar_lea.hbm %s3876_s9, 256  ;;  %s2907_s26 = scalar_lea.hbm %s3928_s4, 512 }
 0x282   : > { %p2904_p6 = scmp.ne.s32.totalorder %s3876_s9, %s2903_s22  ;;  %p2908_p10 = scmp.lt.u32.totalorder %s3876_s9, %s3928_s4 }
 0x283   : > { %p2909_p11 = scmp.lt.u32.totalorder %s2907_s26, %s2903_s22  ;;  %p2911_p13 = scmp.lt.u32.totalorder %s2903_s22, %s3876_s9 }
 0x284   : > { %p2905_p7 = pnand %p2904_p6, %p3041_p4 }
 0x285   : > { %p2910_p12 = por %p2909_p11, %p2908_p10 }
 0x286   : > { %p2906_p9 = pneg %p2905_p7 }
 0x287   : > { %p2912_p0 = por %p2911_p13, %p2910_p12 }
 0x289   : > { %p2913_p1 = pnand %p2912_p0, %p2906_p9 }
 0x28b   : > { %2916 = shalt.err (!%p2913_p1)
}
 0x28c   : > { %s2974_s5 = smov 128   ;;  %s2975_s7 = smov 8  }
 0x28d   : > { %2802 = dma.vmem_to_hbm [thread:$0]  (%p3041_p4), %s3871_s6, 256, %s3876_s9, %s3878_s12, %s2974_s5, %s2974_s5, %s2975_s7  }
 0x28e PF: > { %p2808_p2 = scmp.ge.s32.totalorder %s2967_s20, 2  ;;  %s2474_s8 = sand.u32 1, %s2947_s15  }
 0x28f   : > { %s2475_s11 = scalar_lea.sflag [#allocation4], %s2474_s8 }
 0x290   : > { %p2805_p3 = pnand %p2808_p2, %p3048_p8 }
 0x292   : > { %2942 = dma.done.wait (!%p2805_p3), %s2475_s11, 256  }
 0x293   : > { %2944 = vsyncadd (!%p2805_p3), %s2475_s11, 4294967040  ;;  %s17_s20 = sadd.s32 1, %s2967_s20   ;;  %s3931_s15 = smov %s2951_s16 }
 0x294   : > { %p14_p5 = scmp.ge.s32.totalorder %s17_s20, 4   ;;  %s3932_s16 = smov %s2955_s17 }
 0x295   : > { %s3933_s17 = smov %s3054_s28  ;;  %s3934_s18 = smov %s2963_s19 }
 0x296   : > { %s3935_s19 = smov %s3937_s23  ;;  %16 = sbr.rel (!%p14_p5) target bundleno = 4 (0x4), region = 88 }
 0x29d   :  { %2480 = vsyncpa [#allocation4], 1 }
 0x29e   :  { %2482 = vsyncpa [#allocation4 + $0x1], 1 }

</bundles_post_ra>
